<compile_context>
chip_gen: v7x
topology: tpu7x:2x2x1
jax: 0.10.0
libtpu: 0.0.40
codegen_flags: <defaults>
</compile_context>

<pallas_src>
import jax
import jax.numpy as jnp
from jax.experimental import pallas as pl
from jax.experimental.pallas import tpu as pltpu

FEAT_DIM = 32
TEXT_EMBED_DIM = 16
VOCAB_SIZE = 12
PAD_ID = 0


# ----------------------------- Pallas kernel --------------------------------

def _fm_loss_kernel(t_sm, ms_sm, me_sm, vl_sm,              # scalar prefetch (SMEM, (B,))
                    feat_ref, noise_ref, text_ref,          # (TM,D) f32, (TM,D) f32, (TM,E) bf16
                    wx_ref, wtxt_ref, wsp_ref, wt_ref, b_ref,   # resident weights
                    out_ref):                                # (1,D) f32 accumulator per batch
    """Fused fm_decoder + flow-matching masked-SSE partial reduction.

    per frame tile:
      ut     = feat - noise
      xt     = noise + t * ut
      speech = feat * (frame outside [mask_start, mask_end))
      vt     = tanh(xt@Wx + text@Wtxt + speech@Wsp + t*w_t + b)   (bf16 MXU, f32 acc)
      out   += sum_over_frames((vt - ut)^2 * loss_mask)           (loss_mask built from scalars)
    """
    bi = pl.program_id(0)          # batch index   (parallel)
    tt = pl.program_id(1)          # frame tile    (arbitrary / reduction)
    TM, D = feat_ref.shape

    @pl.when(tt == 0)
    def _():
        out_ref[...] = jnp.zeros_like(out_ref)

    # per-batch scalars from SMEM (no VMEM mask / t streams)
    t = t_sm[bi]
    mask_start = ms_sm[bi]
    mask_end = me_sm[bi]
    valid_len = vl_sm[bi]

    # regenerate masks in-kernel: iota + compares (near-free VPU work)
    frame0 = tt * TM
    frames = frame0 + jax.lax.broadcasted_iota(jnp.int32, (TM, D), 0)
    sc = (frames >= mask_start) & (frames < mask_end)          # speech-condition mask
    keep_f = 1.0 - sc.astype(jnp.float32)                      # 1 where speech is kept as condition
    loss_f = (sc & (frames < valid_len)).astype(jnp.float32)   # sc & ~padding

    feat = feat_ref[...]                                       # (TM, D) f32
    noise = noise_ref[...]                                     # (TM, D) f32
    ut = feat - noise
    xt = noise + t * ut                                        # == feat*t + noise*(1-t)
    speech = feat * keep_f

    # three small-K bf16 MXU dots (== concat([xt,text,speech]) @ W_fused), f32 accumulation
    h = (jnp.dot(xt.astype(jnp.bfloat16), wx_ref[...],
                 preferred_element_type=jnp.float32)
         + jnp.dot(text_ref[...], wtxt_ref[...],
                   preferred_element_type=jnp.float32)
         + jnp.dot(speech.astype(jnp.bfloat16), wsp_ref[...],
                   preferred_element_type=jnp.float32))
    vt = jnp.tanh(h + t * wt_ref[...] + b_ref[...])

    diff = vt - ut
    sq = diff * diff * loss_f

    # stage-1 reduce (sublane axis); accumulate into the resident per-batch block.
    out_ref[...] += jnp.sum(sq, axis=0, keepdims=True)         # (1, D)


def _pick_frame_tile(T, target=512):
    """Largest frame tile <= target that divides T and is a multiple of 8
    (whole sequence when T <= target)."""
    if T <= target:
        return T
    start = target - (target % 8)
    for tm in range(start, 7, -8):
        if T % tm == 0:
            return tm
    return T  # fallback: whole sequence per grid step


def fm_loss_partials_call(feat, noise, text_cond_bf16, t_b, mask_start, mask_end,
                          valid_len, w_x, w_txt, w_sp, w_t, b_fm):
    B, T, D = feat.shape
    E = text_cond_bf16.shape[-1]
    TM = _pick_frame_tile(T)
    n_tiles = T // TM

    grid_spec = pltpu.PrefetchScalarGridSpec(
        num_scalar_prefetch=4,                 # t, mask_start, mask_end, valid_len -> SMEM
        grid=(B, n_tiles),
        in_specs=[
            pl.BlockSpec((None, TM, D), lambda bi, tt, *_: (bi, tt, 0)),   # features  (f32)
            pl.BlockSpec((None, TM, D), lambda bi, tt, *_: (bi, tt, 0)),   # noise     (f32)
            pl.BlockSpec((None, TM, E), lambda bi, tt, *_: (bi, tt, 0)),   # text cond (bf16)
            pl.BlockSpec((D, D), lambda bi, tt, *_: (0, 0)),               # w_x   (VMEM-resident)
            pl.BlockSpec((E, D), lambda bi, tt, *_: (0, 0)),               # w_txt (VMEM-resident)
            pl.BlockSpec((D, D), lambda bi, tt, *_: (0, 0)),               # w_sp  (VMEM-resident)
            pl.BlockSpec((1, D), lambda bi, tt, *_: (0, 0)),               # w_t
            pl.BlockSpec((1, D), lambda bi, tt, *_: (0, 0)),               # bias
        ],
        # constant over tt -> resident accumulator, written back once per batch
        out_specs=pl.BlockSpec((None, 1, D), lambda bi, tt, *_: (bi, 0, 0)),
    )
    return pl.pallas_call(
        _fm_loss_kernel,
        out_shape=jax.ShapeDtypeStruct((B, 1, D), jnp.float32),
        grid_spec=grid_spec,
        compiler_params=pltpu.CompilerParams(
            dimension_semantics=("parallel", "arbitrary")),
    )(t_b, mask_start, mask_end, valid_len,
      feat, noise, text_cond_bf16, w_x, w_txt, w_sp, w_t, b_fm)


# --------------------------- JAX glue (non-hot path) ------------------------

def make_pad_mask(lens, max_len):
    # True means padded (masked) position.
    return jnp.arange(max_len)[None, :] >= lens[:, None]


def pad_labels(tokens, pad_id, max_len):
    return jnp.array(
        [list(tok) + [pad_id] * (max_len - len(tok)) for tok in tokens],
        dtype=jnp.int32)


def get_tokens_index(features_lens, tokens_lens, num_frames):
    # Each token gets floor(feat_len / tok_len) frames; the last token absorbs
    # the remainder (matches the reference get_tokens_index loop).
    avg = jnp.maximum(features_lens // tokens_lens, 1)
    frames = jnp.arange(num_frames)[None, :]
    return jnp.minimum(frames // avg[:, None], tokens_lens[:, None] - 1)


def condition_time_bounds(key, features_lens, mask_percent):
    """Per-batch [mask_start, mask_end) of the speech-condition mask (scalars only;
    the boolean (B,T) mask itself is regenerated inside the kernel)."""
    k1, k2 = jax.random.split(key)
    fl = features_lens.astype(jnp.float32)
    u1 = jax.random.uniform(k1, features_lens.shape)
    u2 = jax.random.uniform(k2, features_lens.shape)
    mask_size = (u1 * (mask_percent[1] - mask_percent[0]) + mask_percent[0]) * fl
    mask_starts = (u2 * (fl - mask_size)).astype(jnp.int32)
    mask_ends = mask_starts + mask_size.astype(jnp.int32)
    return mask_starts, mask_ends


class TtsModelPallas:
    def __init__(self, key, vocab_size=VOCAB_SIZE, text_embed_dim=TEXT_EMBED_DIM,
                 feat_dim=FEAT_DIM, pad_id=PAD_ID):
        self.feat_dim = feat_dim
        self.text_embed_dim = text_embed_dim
        self.pad_id = pad_id
        ks = jax.random.split(key, 8)
        s = 0.1
        # nn.Embedding(vocab_size, text_embed_dim)
        self.embed_table = s * jax.random.normal(
            ks[0], (vocab_size, text_embed_dim), jnp.float32)
        # synthetic text_encoder params (runs in plain XLA now)
        self.w_te = s * jax.random.normal(
            ks[1], (text_embed_dim, text_embed_dim), jnp.float32)
        self.b_te = s * jax.random.normal(ks[2], (1, text_embed_dim), jnp.float32)
        # synthetic fm_decoder params, split per concat segment [xt | text | speech]
        # (three small-K dots == one fused concat matmul; bf16 for the MXU).
        self.w_x = (s * jax.random.normal(
            ks[3], (feat_dim, feat_dim), jnp.float32)).astype(jnp.bfloat16)
        self.w_txt = (s * jax.random.normal(
            ks[4], (text_embed_dim, feat_dim), jnp.float32)).astype(jnp.bfloat16)
        self.w_sp = (s * jax.random.normal(
            ks[5], (feat_dim, feat_dim), jnp.float32)).astype(jnp.bfloat16)
        self.w_t = s * jax.random.normal(ks[6], (1, feat_dim), jnp.float32)
        self.b_fm = s * jax.random.normal(ks[7], (1, feat_dim), jnp.float32)

    # --- forward_text_embed + forward_text_condition (forward_text_train) ---
    def forward_text_train(self, tokens, features_lens, num_frames):
        tokens_lens = jnp.array([len(tok) for tok in tokens], dtype=jnp.int32)
        max_tok = max(len(tok) for tok in tokens)
        tokens_padded = pad_labels(tokens, self.pad_id, max_tok)       # (B, S)
        embed = self.embed_table[tokens_padded]                        # (B, S, E) gather
        # Synthetic text encoder: tiny (S,E)@(E,E) + tanh -> plain XLA, fused with
        # the gathers (perf feedback: far below MXU/step-overhead scale for Pallas).
        embed = jnp.tanh(embed @ self.w_te + self.b_te)                # (B, S, E) f32
        padding_mask = make_pad_mask(features_lens, num_frames)        # (B, T)
        tok_idx = get_tokens_index(features_lens, tokens_lens, num_frames)
        B = embed.shape[0]
        idx = jnp.broadcast_to(tok_idx[:, :, None],
                               (B, num_frames, self.text_embed_dim))
        text_condition = jnp.take_along_axis(embed, idx, axis=1)       # (B, T, E)
        # bf16 end-to-end: its only consumer is the bf16 MXU matmul in the kernel.
        return text_condition.astype(jnp.bfloat16), padding_mask

    # --- TtsModel.forward (training loss) ---
    def forward(self, tokens, features, features_lens, noise, t,
                condition_drop_ratio=0.0, mask_key=None):
        B, T, D = features.shape
        # num_frames = int(features_lens.max()); batch is built so it equals T.
        text_condition, _padding_mask = self.forward_text_train(
            tokens, features_lens, T)

        k_mask, k_drop = jax.random.split(mask_key)
        mask_start, mask_end = condition_time_bounds(
            k_mask, features_lens, (0.7, 1.0))

        if condition_drop_ratio > 0.0:
            drop_mask = (jax.random.uniform(k_drop, (B, 1, 1))
                         > condition_drop_ratio)
            text_condition = text_condition * drop_mask.astype(text_condition.dtype)

        t_b = t.reshape(B).astype(jnp.float32)                  # (B,) for SMEM
        valid_len = features_lens.astype(jnp.int32)

        # Fused Pallas kernel: interpolation, in-kernel masking, 3 bf16 dots,
        # tanh, masked squared error, per-batch resident partial-sum accumulator.
        partials = fm_loss_partials_call(
            features, noise, text_condition, t_b, mask_start, mask_end, valid_len,
            self.w_x, self.w_txt, self.w_sp, self.w_t, self.b_fm)   # (B, 1, D)

        num = jnp.sum(partials)                                  # tiny final reduce in XLA
        # denominator = |sc_mask & ~padding| * D, from the same per-batch scalars
        cnt = jnp.clip(jnp.minimum(mask_end, valid_len)
                       - jnp.minimum(mask_start, valid_len), 0, None)
        den = jnp.sum(cnt).astype(jnp.float32) * float(D)
        return num / jnp.maximum(den, 1.0)


if __name__ == "__main__":
    key = jax.random.PRNGKey(0)
    k_model, k_feat, k_noise, k_t, k_mask = jax.random.split(key, 5)

    model = TtsModelPallas(k_model)

    B, T = 2, 16
    tokens = [[3, 5, 2, 7, 1, 4], [2, 8, 6, 1, 9, 3, 5, 10]]
    features = jax.random.normal(k_feat, (B, T, FEAT_DIM), jnp.float32)
    features_lens = jnp.array([12, 16], dtype=jnp.int32)
    noise = jax.random.normal(k_noise, (B, T, FEAT_DIM), jnp.float32)
    t = jax.random.uniform(k_t, (B, 1, 1), jnp.float32, minval=0.05, maxval=0.95)

    fm_loss = model.forward(tokens, features, features_lens, noise, t,
                            condition_drop_ratio=0.0, mask_key=k_mask)
    fm_loss = jax.block_until_ready(fm_loss)
    assert fm_loss.shape == () and bool(jnp.isfinite(fm_loss))
    print("KERNEL_OK")
</pallas_src>

<mosaic_0001>
module attributes {stable_mosaic.version = 11 : i64} {
  func.func @_fm_loss_kernel(%arg0: i32, %arg1: i32, %arg2: memref<2xf32, #tpu.memory_space<smem>>, %arg3: memref<2xi32, #tpu.memory_space<smem>>, %arg4: memref<2xi32, #tpu.memory_space<smem>>, %arg5: memref<2xi32, #tpu.memory_space<smem>>, %arg6: memref<1x16x32xf32, #tpu.memory_space<vmem>>, %arg7: memref<1x16x32xf32, #tpu.memory_space<vmem>>, %arg8: memref<1x16x16xbf16, #tpu.memory_space<vmem>>, %arg9: memref<32x32xbf16, #tpu.memory_space<vmem>>, %arg10: memref<16x32xbf16, #tpu.memory_space<vmem>>, %arg11: memref<32x32xbf16, #tpu.memory_space<vmem>>, %arg12: memref<1x32xf32, #tpu.memory_space<vmem>>, %arg13: memref<1x32xf32, #tpu.memory_space<vmem>>, %arg14: memref<1x1x32xf32, #tpu.memory_space<vmem>>) attributes {dimension_semantics = [#tpu.dimension_semantics<parallel>, #tpu.dimension_semantics<arbitrary>], iteration_bounds = array<i64: 2, 1>, scalar_prefetch = 4 : i64, scratch_operands = 0 : i64, tpu.core_type = #tpu.core_type<tc>, window_params = [{transform_indices = @transform_0, window_bounds = array<i64: 1, 16, 32>}, {transform_indices = @transform_1, window_bounds = array<i64: 1, 16, 32>}, {transform_indices = @transform_2, window_bounds = array<i64: 1, 16, 16>}, {pipeline_mode = #tpu.pipeline_mode<synchronous>, transform_indices = @transform_3, window_bounds = array<i64: 32, 32>}, {pipeline_mode = #tpu.pipeline_mode<synchronous>, transform_indices = @transform_4, window_bounds = array<i64: 16, 32>}, {pipeline_mode = #tpu.pipeline_mode<synchronous>, transform_indices = @transform_5, window_bounds = array<i64: 32, 32>}, {pipeline_mode = #tpu.pipeline_mode<synchronous>, transform_indices = @transform_6, window_bounds = array<i64: 1, 32>}, {pipeline_mode = #tpu.pipeline_mode<synchronous>, transform_indices = @transform_7, window_bounds = array<i64: 1, 32>}, {transform_indices = @transform_8, window_bounds = array<i64: 1, 1, 32>}]} {
    %c0_i32 = arith.constant 0 : i32
    %0 = arith.cmpi eq, %arg1, %c0_i32 : i32
    %1 = arith.extui %0 : i1 to i32
    %c0_i32_0 = arith.constant 0 : i32
    %2 = arith.cmpi ne, %1, %c0_i32_0 : i32
    scf.if %2 {
      %cst_29 = arith.constant 0.000000e+00 : f32
      %70 = vector.broadcast %cst_29 : f32 to vector<1x32xf32>
      %c0_30 = arith.constant 0 : index
      %c0_31 = arith.constant 0 : index
      %c0_32 = arith.constant 0 : index
      %71 = vector.load %arg14[%c0_30, %c0_31, %c0_32] : memref<1x1x32xf32, #tpu.memory_space<vmem>>, vector<1x1x32xf32>
      %72 = vector.shape_cast %71 : vector<1x1x32xf32> to vector<1x32xf32>
      %73 = vector.shape_cast %70 : vector<1x32xf32> to vector<1x1x32xf32>
      tpu.vector_store %arg14[%c0_30, %c0_31, %c0_32], %73 {strides = array<i32>} : memref<1x1x32xf32, #tpu.memory_space<vmem>>, vector<1x1x32xf32>,
    } else {
    }
    %3 = arith.index_cast %arg0 : i32 to index
    %4 = memref.load %arg2[%3] : memref<2xf32, #tpu.memory_space<smem>>
    %5 = arith.index_cast %arg0 : i32 to index
    %6 = memref.load %arg3[%5] : memref<2xi32, #tpu.memory_space<smem>>
    %7 = arith.index_cast %arg0 : i32 to index
    %8 = memref.load %arg4[%7] : memref<2xi32, #tpu.memory_space<smem>>
    %9 = arith.index_cast %arg0 : i32 to index
    %10 = memref.load %arg5[%9] : memref<2xi32, #tpu.memory_space<smem>>
    %c16_i32 = arith.constant 16 : i32
    %11 = arith.muli %arg1, %c16_i32 : i32
    %12 = tpu.iota {dimensions = array<i32: 0>} : vector<16x32xi32>
    %13 = vector.broadcast %11 : i32 to vector<16x32xi32>
    %14 = arith.addi %13, %12 : vector<16x32xi32>
    %15 = vector.broadcast %6 : i32 to vector<16x32xi32>
    %16 = arith.cmpi sge, %14, %15 : vector<16x32xi32>
    %17 = vector.broadcast %8 : i32 to vector<16x32xi32>
    %18 = arith.cmpi slt, %14, %17 : vector<16x32xi32>
    %19 = arith.andi %16, %18 : vector<16x32xi1>
    %20 = arith.extui %19 : vector<16x32xi1> to vector<16x32xi32>
    %21 = arith.sitofp %20 : vector<16x32xi32> to vector<16x32xf32>
    %cst = arith.constant 1.000000e+00 : f32
    %22 = vector.broadcast %cst : f32 to vector<16x32xf32>
    %23 = arith.subf %22, %21 : vector<16x32xf32>
    %24 = vector.broadcast %10 : i32 to vector<16x32xi32>
    %25 = arith.cmpi slt, %14, %24 : vector<16x32xi32>
    %26 = arith.andi %19, %25 : vector<16x32xi1>
    %27 = arith.extui %26 : vector<16x32xi1> to vector<16x32xi32>
    %28 = arith.sitofp %27 : vector<16x32xi32> to vector<16x32xf32>
    %c0 = arith.constant 0 : index
    %c0_1 = arith.constant 0 : index
    %c0_2 = arith.constant 0 : index
    %29 = vector.load %arg6[%c0, %c0_1, %c0_2] : memref<1x16x32xf32, #tpu.memory_space<vmem>>, vector<1x16x32xf32>
    %30 = vector.shape_cast %29 : vector<1x16x32xf32> to vector<16x32xf32>
    %c0_3 = arith.constant 0 : index
    %c0_4 = arith.constant 0 : index
    %c0_5 = arith.constant 0 : index
    %31 = vector.load %arg7[%c0_3, %c0_4, %c0_5] : memref<1x16x32xf32, #tpu.memory_space<vmem>>, vector<1x16x32xf32>
    %32 = vector.shape_cast %31 : vector<1x16x32xf32> to vector<16x32xf32>
    %33 = arith.subf %30, %32 : vector<16x32xf32>
    %34 = vector.broadcast %4 : f32 to vector<16x32xf32>
    %35 = arith.mulf %34, %33 : vector<16x32xf32>
    %36 = arith.addf %32, %35 : vector<16x32xf32>
    %37 = arith.mulf %30, %23 : vector<16x32xf32>
    %38 = arith.truncf %36 : vector<16x32xf32> to vector<16x32xbf16>
    %c0_6 = arith.constant 0 : index
    %c0_7 = arith.constant 0 : index
    %39 = vector.load %arg9[%c0_6, %c0_7] : memref<32x32xbf16, #tpu.memory_space<vmem>>, vector<32x32xbf16>
    %cst_8 = arith.constant dense<0.000000e+00> : vector<16x32xf32>
    %40 = tpu.matmul %38, %39, %cst_8 {dimension_numbers = #tpu.dot_dimension_numbers<[1], [0], [0], [1], [0, 0, 1, 1], [], []>} : vector<16x32xbf16>, vector<32x32xbf16>, vector<16x32xf32> -> vector<16x32xf32>
    %c0_9 = arith.constant 0 : index
    %c0_10 = arith.constant 0 : index
    %c0_11 = arith.constant 0 : index
    %41 = vector.load %arg8[%c0_9, %c0_10, %c0_11] : memref<1x16x16xbf16, #tpu.memory_space<vmem>>, vector<1x16x16xbf16>
    %42 = vector.shape_cast %41 : vector<1x16x16xbf16> to vector<16x16xbf16>
    %c0_12 = arith.constant 0 : index
    %c0_13 = arith.constant 0 : index
    %43 = vector.load %arg10[%c0_12, %c0_13] : memref<16x32xbf16, #tpu.memory_space<vmem>>, vector<16x32xbf16>
    %cst_14 = arith.constant dense<0.000000e+00> : vector<16x32xf32>
    %44 = tpu.matmul %42, %43, %cst_14 {dimension_numbers = #tpu.dot_dimension_numbers<[1], [0], [0], [1], [0, 0, 1, 1], [], []>} : vector<16x16xbf16>, vector<16x32xbf16>, vector<16x32xf32> -> vector<16x32xf32>
    %45 = arith.addf %40, %44 : vector<16x32xf32>
    %46 = arith.truncf %37 : vector<16x32xf32> to vector<16x32xbf16>
    %c0_15 = arith.constant 0 : index
    %c0_16 = arith.constant 0 : index
    %47 = vector.load %arg11[%c0_15, %c0_16] : memref<32x32xbf16, #tpu.memory_space<vmem>>, vector<32x32xbf16>
    %cst_17 = arith.constant dense<0.000000e+00> : vector<16x32xf32>
    %48 = tpu.matmul %46, %47, %cst_17 {dimension_numbers = #tpu.dot_dimension_numbers<[1], [0], [0], [1], [0, 0, 1, 1], [], []>} : vector<16x32xbf16>, vector<32x32xbf16>, vector<16x32xf32> -> vector<16x32xf32>
    %49 = arith.addf %45, %48 : vector<16x32xf32>
    %c0_18 = arith.constant 0 : index
    %c0_19 = arith.constant 0 : index
    %50 = vector.load %arg12[%c0_18, %c0_19] : memref<1x32xf32, #tpu.memory_space<vmem>>, vector<1x32xf32>
    %51 = vector.broadcast %4 : f32 to vector<1x32xf32>
    %52 = arith.mulf %51, %50 : vector<1x32xf32>
    %53 = vector.broadcast %52 : vector<1x32xf32> to vector<16x32xf32>
    %54 = arith.addf %49, %53 : vector<16x32xf32>
    %c0_20 = arith.constant 0 : index
    %c0_21 = arith.constant 0 : index
    %55 = vector.load %arg13[%c0_20, %c0_21] : memref<1x32xf32, #tpu.memory_space<vmem>>, vector<1x32xf32>
    %56 = vector.broadcast %55 : vector<1x32xf32> to vector<16x32xf32>
    %57 = arith.addf %54, %56 : vector<16x32xf32>
    %58 = math.tanh %57 : vector<16x32xf32>
    %59 = arith.subf %58, %33 : vector<16x32xf32>
    %60 = arith.mulf %59, %59 : vector<16x32xf32>
    %61 = arith.mulf %60, %28 : vector<16x32xf32>
    %c0_22 = arith.constant 0 : index
    %c0_23 = arith.constant 0 : index
    %c0_24 = arith.constant 0 : index
    %62 = vector.load %arg14[%c0_22, %c0_23, %c0_24] : memref<1x1x32xf32, #tpu.memory_space<vmem>>, vector<1x1x32xf32>
    %63 = vector.shape_cast %62 : vector<1x1x32xf32> to vector<1x32xf32>
    %cst_25 = arith.constant dense<0.000000e+00> : vector<32xf32>
    %64 = vector.multi_reduction <add>, %61, %cst_25 [0] : vector<16x32xf32> to vector<32xf32>
    %65 = vector.shape_cast %64 : vector<32xf32> to vector<1x32xf32>
    %66 = arith.addf %63, %65 : vector<1x32xf32>
    %c0_26 = arith.constant 0 : index
    %c0_27 = arith.constant 0 : index
    %c0_28 = arith.constant 0 : index
    %67 = vector.load %arg14[%c0_26, %c0_27, %c0_28] : memref<1x1x32xf32, #tpu.memory_space<vmem>>, vector<1x1x32xf32>
    %68 = vector.shape_cast %67 : vector<1x1x32xf32> to vector<1x32xf32>
    %69 = vector.shape_cast %66 : vector<1x32xf32> to vector<1x1x32xf32>
    tpu.vector_store %arg14[%c0_26, %c0_27, %c0_28], %69 {strides = array<i32>} : memref<1x1x32xf32, #tpu.memory_space<vmem>>, vector<1x1x32xf32>,
    return
  }
  func.func @transform_0(%arg0: i32, %arg1: i32, %arg2: memref<2xf32, #tpu.memory_space<smem>>, %arg3: memref<2xi32, #tpu.memory_space<smem>>, %arg4: memref<2xi32, #tpu.memory_space<smem>>, %arg5: memref<2xi32, #tpu.memory_space<smem>>) -> (i32, i32, i32) {
    %c0_i32 = arith.constant 0 : i32
    %c0_i32_0 = arith.constant 0 : i32
    return %arg0, %arg1, %c0_i32 : i32, i32, i32
  }
  func.func @transform_1(%arg0: i32, %arg1: i32, %arg2: memref<2xf32, #tpu.memory_space<smem>>, %arg3: memref<2xi32, #tpu.memory_space<smem>>, %arg4: memref<2xi32, #tpu.memory_space<smem>>, %arg5: memref<2xi32, #tpu.memory_space<smem>>) -> (i32, i32, i32) {
    %c0_i32 = arith.constant 0 : i32
    %c0_i32_0 = arith.constant 0 : i32
    return %arg0, %arg1, %c0_i32 : i32, i32, i32
  }
  func.func @transform_2(%arg0: i32, %arg1: i32, %arg2: memref<2xf32, #tpu.memory_space<smem>>, %arg3: memref<2xi32, #tpu.memory_space<smem>>, %arg4: memref<2xi32, #tpu.memory_space<smem>>, %arg5: memref<2xi32, #tpu.memory_space<smem>>) -> (i32, i32, i32) {
    %c0_i32 = arith.constant 0 : i32
    %c0_i32_0 = arith.constant 0 : i32
    return %arg0, %arg1, %c0_i32 : i32, i32, i32
  }
  func.func @transform_3(%arg0: i32, %arg1: i32, %arg2: memref<2xf32, #tpu.memory_space<smem>>, %arg3: memref<2xi32, #tpu.memory_space<smem>>, %arg4: memref<2xi32, #tpu.memory_space<smem>>, %arg5: memref<2xi32, #tpu.memory_space<smem>>) -> (i32, i32) {
    %c0_i32 = arith.constant 0 : i32
    %c0_i32_0 = arith.constant 0 : i32
    %c0_i32_1 = arith.constant 0 : i32
    return %c0_i32, %c0_i32_0 : i32, i32
  }
  func.func @transform_4(%arg0: i32, %arg1: i32, %arg2: memref<2xf32, #tpu.memory_space<smem>>, %arg3: memref<2xi32, #tpu.memory_space<smem>>, %arg4: memref<2xi32, #tpu.memory_space<smem>>, %arg5: memref<2xi32, #tpu.memory_space<smem>>) -> (i32, i32) {
    %c0_i32 = arith.constant 0 : i32
    %c0_i32_0 = arith.constant 0 : i32
    %c0_i32_1 = arith.constant 0 : i32
    return %c0_i32, %c0_i32_0 : i32, i32
  }
  func.func @transform_5(%arg0: i32, %arg1: i32, %arg2: memref<2xf32, #tpu.memory_space<smem>>, %arg3: memref<2xi32, #tpu.memory_space<smem>>, %arg4: memref<2xi32, #tpu.memory_space<smem>>, %arg5: memref<2xi32, #tpu.memory_space<smem>>) -> (i32, i32) {
    %c0_i32 = arith.constant 0 : i32
    %c0_i32_0 = arith.constant 0 : i32
    %c0_i32_1 = arith.constant 0 : i32
    return %c0_i32, %c0_i32_0 : i32, i32
  }
  func.func @transform_6(%arg0: i32, %arg1: i32, %arg2: memref<2xf32, #tpu.memory_space<smem>>, %arg3: memref<2xi32, #tpu.memory_space<smem>>, %arg4: memref<2xi32, #tpu.memory_space<smem>>, %arg5: memref<2xi32, #tpu.memory_space<smem>>) -> (i32, i32) {
    %c0_i32 = arith.constant 0 : i32
    %c0_i32_0 = arith.constant 0 : i32
    %c0_i32_1 = arith.constant 0 : i32
    return %c0_i32, %c0_i32_0 : i32, i32
  }
  func.func @transform_7(%arg0: i32, %arg1: i32, %arg2: memref<2xf32, #tpu.memory_space<smem>>, %arg3: memref<2xi32, #tpu.memory_space<smem>>, %arg4: memref<2xi32, #tpu.memory_space<smem>>, %arg5: memref<2xi32, #tpu.memory_space<smem>>) -> (i32, i32) {
    %c0_i32 = arith.constant 0 : i32
    %c0_i32_0 = arith.constant 0 : i32
    %c0_i32_1 = arith.constant 0 : i32
    return %c0_i32, %c0_i32_0 : i32, i32
  }
  func.func @transform_8(%arg0: i32, %arg1: i32, %arg2: memref<2xf32, #tpu.memory_space<smem>>, %arg3: memref<2xi32, #tpu.memory_space<smem>>, %arg4: memref<2xi32, #tpu.memory_space<smem>>, %arg5: memref<2xi32, #tpu.memory_space<smem>>) -> (i32, i32, i32) {
    %c0_i32 = arith.constant 0 : i32
    %c0_i32_0 = arith.constant 0 : i32
    %c0_i32_1 = arith.constant 0 : i32
    return %arg0, %c0_i32, %c0_i32_0 : i32, i32, i32
  }
}

</mosaic_0001>

<bundles_post_ra>
// kernel: tpu_custom_call.1
= control target key start
LH: loop header
LB: loop body
LE: loop exit
PB: predicated region body
PF: predicated region fallthrough
CT: control target
= control target key end

     0   :  { %s1872_s0 = inlined_call_operand.hbm [shape: f32[2], index: 0, kind: input, shape index: {}]   ;;  %s1873_s4 = inlined_call_operand.hbm [shape: f32[2,16,32], index: 4, kind: input, shape index: {}]   ;;  %s1874_s5 = inlined_call_operand.hbm [shape: f32[2,16,32], index: 5, kind: input, shape index: {}]   ;;  %s1875_s6 = inlined_call_operand.vmem [shape: bf16[2,16,16], index: 6, kind: input, shape index: {}]   ;;  %s1876_s7 = inlined_call_operand.hbm [shape: bf16[32,32], index: 7, kind: input, shape index: {}]   ;;  %s1877_s8 = inlined_call_operand.hbm [shape: bf16[16,32], index: 8, kind: input, shape index: {}]   ;;  %s1878_s9 = inlined_call_operand.vmem [shape: bf16[32,32], index: 9, kind: input, shape index: {}]   ;;  %s1879_s10 = inlined_call_operand.vmem [shape: f32[1,32], index: 10, kind: input, shape index: {}]   ;;  %s1880_s11 = inlined_call_operand.vmem [shape: f32[1,32], index: 11, kind: input, shape index: {}]   ;;  %s1881_s12 = inlined_call_operand.hbm [shape: f32[2,1,32], index: 12, kind: output, shape index: {}]   ;;  %s1882_s1 = inlined_call_operand.vmem [shape: s32[2], index: 1, kind: input, shape index: {}]   ;;  %s1883_s2 = inlined_call_operand.vmem [shape: s32[2], index: 2, kind: input, shape index: {}]   ;;  %s1884_s3 = inlined_call_operand.hbm [shape: s32[2], index: 3, kind: input, shape index: {}]  }
   0x1   :  { %1892 = sst [smem:[#allocation26_spill]] %s1873_s4  ;;  %s1077_s23 = scalar_lea.hbm %s1872_s0, 16 }
   0x2   :  { %1893 = sst [smem:[#allocation27_spill]] %s1876_s7  ;;  %p1078_p0 = scmp.ne.s32.totalorder %s1872_s0, %s1077_s23 }
   0x3   :  { %1894 = sst [smem:[#allocation28_spill]] %s1877_s8  ;;  %p1081_p1 = scmp.lt.u32.totalorder %s1077_s23, %s1872_s0 }
   0x5   :  { %p1083_p2 = pnand %p1081_p1, %p1078_p0 }
   0x7   :  { %1086 = shalt.err (!%p1083_p2)  }
   0x8   :  { %s1335_s28 = smov [#allocation3]   ;;  %s19_s15 = sshll.u32 %s1882_s1, 4  ;;  %s20_s15 = int_to_ptr.vmem [resolvable:$true] %s19_s15 }
   0x9   :  { %18 = dma.hbm_to_smem %s1872_s0, 16, %s1335_s28, [#allocation2] }
   0xa   :  { %s23_s18 = sshll.u32 %s1883_s2, 4  ;;  %s1087_s19 = scalar_lea.vmem %s20_s15, 16  ;;  %s24_s18 = int_to_ptr.vmem [resolvable:$true] %s23_s18 }
   0xb   :  { %p1088_p3 = scmp.ne.s32.totalorder %s20_s15, %s1087_s19  ;;  %p1092_p4 = scmp.lt.s32.totalorder %s20_s15, %s20_s15 }
   0xc   :  { %p1093_p5 = scmp.lt.s32.totalorder %s1087_s19, %s1087_s19 }
   0xe   :  { %p1094_p6 = por %p1093_p5, %p1092_p4 }
  0x10   :  { %p1095_p7 = pnand %p1094_p6, %p1088_p3 }
  0x12   :  { %1098 = shalt.err (!%p1095_p7)  }
  0x13   :  { %s1336_s20 = smov [#allocation4]   ;;  %s1099_s0 = scalar_lea.vmem %s24_s18, 16 }
  0x14   :  { %22 = dma.vmem_to_smem %s20_s15, 16, %s1336_s20, [#allocation2] }
  0x15   :  { %p1100_p8 = scmp.ne.s32.totalorder %s24_s18, %s1099_s0  ;;  %p1104_p9 = scmp.lt.s32.totalorder %s24_s18, %s24_s18 }
  0x16   :  { %p1105_p10 = scmp.lt.s32.totalorder %s1099_s0, %s1099_s0 }
  0x18   :  { %p1106_p11 = por %p1105_p10, %p1104_p9 }
  0x1a   :  { %p1107_p12 = pnand %p1106_p11, %p1100_p8 }
  0x1c   :  { %1110 = shalt.err (!%p1107_p12)  }
  0x1d   :  { %s1337_s1 = smov [#allocation5]   ;;  %s1111_s22 = scalar_lea.hbm %s1884_s3, 16 }
  0x1e   :  { %26 = dma.vmem_to_smem %s24_s18, 16, %s1337_s1, [#allocation2] }
  0x1f   :  { %p1112_p13 = scmp.ne.s32.totalorder %s1884_s3, %s1111_s22  ;;  %p1115_p0 = scmp.lt.u32.totalorder %s1111_s22, %s1884_s3 }
  0x21   :  { %p1117_p1 = pnand %p1115_p0, %p1112_p13 }
  0x23   :  { %1120 = shalt.err (!%p1117_p1)  }
  0x24   :  { %s1338_s27 = smov [#allocation6]  }
  0x25   :  { %28 = dma.hbm_to_smem %s1884_s3, 16, %s1338_s27, [#allocation2] }
  0x26   :  { %1289 = dma.done.wait [#allocation2], 64 }
  0x27   :  { %1290 = vsyncadd [#allocation2], 4294967232 }
  0x28   :  { %30 = sfence }
  0x29   :  { %31 = vsyncpa [#allocation8], 0 }
  0x2a   :  { %33 = vsyncpa [#allocation8 + $0x1], 0 }
  0x2b   :  { %34 = vsyncpa [#allocation11], 0 }
  0x2c   :  { %36 = vsyncpa [#allocation11 + $0x1], 0 }
  0x2d   :  { %37 = vsyncpa [#allocation14], 0 }
  0x2e   :  { %38 = vsyncpa [#allocation9], 0 }
  0x2f   :  { %40 = vsyncpa [#allocation9 + $0x1], 0  ;;  %s1445_s30 = smov 0   ;;  %s1447_s13 = smov 0  }
  0x30   :  { %s1449_s14 = smov 0   ;;  %s1451_s15 = smov 0  }
  0x31   :  { %s1453_s16 = smov 0   ;;  %s1455_s3 = smov 0  }
  0x32 LB: > { %1895 = sst [smem:[#allocation22_spill]] %s1313_s30  ;;  %s1476_s17 = sadd.s32 4294967295, %s1333_s3   ;;  %s1333_s3 = sphi %s1455_s3, %s46_s3   ;;  %s1329_s16 = sphi %s1453_s16, %s1938_s16   ;;  %s1325_s15 = sphi %s1451_s15, %s1937_s15   ;;  %s1321_s14 = sphi %s1449_s14, %s1936_s14   ;;  %s1317_s13 = sphi %s1447_s13, %s1935_s13   ;;  %s1313_s30 = sphi %s1445_s30, %s1934_s30  }
  0x33   : > { %s901_s18 = sadd.s32 4294967294, %s1333_s3   ;;  %p80_p2 = scmp.ne.s32.totalorder %s1317_s13, %s1313_s30 }
  0x34   : > { %p1885_p3 = scmp.eq.s32.totalorder %s1476_s17, 0  ;;  %p271_p5 = scmp.eq.s32.totalorder %s901_s18, 1 }
  0x35   : > { %p902_p7 = scmp.ge.s32.totalorder %s1333_s3, 1  ;;  %p278_p9 = scmp.lt.s32.totalorder %s1333_s3, 3 }
  0x36   : > { %p1485_p6 = por %p1885_p3, %p80_p2  ;;  %p1490_p8 = por %p271_p5, %p80_p2 }
  0x37   : > { %p1495_p10 = pnand %p902_p7, %p278_p9  ;;  %s1339_s1 = smov [#allocation12]  }
  0x38   : > { %s1896_s19 = scalar_select %p1485_p6, 1, 0 }
  0x39   : > { %s1897_s20 = scalar_select %p1490_p8, 1, 0 }
  0x3a   : > { %s290_s2 = sshll.u32 %s1339_s1, 4  ;;  %p983_p11 = pneg %p1495_p10  ;;  %s1499_s2 = int_to_ptr.vmem [resolvable:$true] %s290_s2 }
  0x3b   : > { %1898 = sst [smem:[#allocation23_spill]] %s1897_s20  ;;  %s1340_s22 = smov [#allocation13]  }
  0x3c   : > { %p1506_p13 = pnand %p983_p11, %p1885_p3  ;;  %s303_s23 = sshll.u32 %s1340_s22, 4  ;;  %s1510_s23 = int_to_ptr.vmem [resolvable:$true] %s303_s23 }
  0x3d   : > { %s1901_s7 = sld [smem:[#allocation27_spill]] }
  0x3e   : > { %p1123_p1 = pneg %p1506_p13 }
  0x43   : > { %s1121_s26 = scalar_lea.hbm %s1901_s7, 256 }
  0x44   : > { %p1122_p0 = scmp.ne.s32.totalorder %s1901_s7, %s1121_s26  ;;  %p1128_p7 = scmp.lt.u32.totalorder %s1121_s26, %s1901_s7 }
  0x46   : > { %p1124_p2 = pnand %p1123_p1, %p1122_p0 }
  0x48   : > { %p1125_p5 = pneg %p1124_p2 }
  0x4a   : > { %p1130_p9 = pnand %p1128_p7, %p1125_p5 }
  0x4c   : > { %1133 = shalt.err (!%p1130_p9)
}
  0x4d   : > { %s1134_s1 = scalar_lea.vmem %s1499_s2, 256  ;;  %p1142_p4 = scmp.lt.s32.totalorder %s1499_s2, %s1499_s2 }
  0x4e   : > { %p1135_p11 = scmp.ne.s32.totalorder %s1499_s2, %s1134_s1  ;;  %p1143_p0 = scmp.lt.s32.totalorder %s1134_s1, %s1134_s1 }
  0x50   : > { %p1137_p12 = pnand %p1135_p11, %p1123_p1  ;;  %p1144_p2 = por %p1143_p0, %p1142_p4 }
  0x52   : > { %p1138_p3 = pneg %p1137_p12 }
  0x54   : > { %p1145_p8 = pnand %p1144_p2, %p1138_p3 }
  0x56   : > { %1148 = shalt.err (!%p1145_p8)
}
  0x57   : > { %s1341_s22 = smov 64   ;;  %s1342_s24 = smov 4  }
  0x58   : > { %986 = dma.hbm_to_vmem [thread:$0]  (!%p1506_p13), %s1901_s7, 256, %s1499_s2, [#allocation11], %s1341_s22, %s1341_s22, %s1342_s24  }
  0x59   : > { %s1902_s8 = sld [smem:[#allocation28_spill]] }
  0x5f   : > { %s1149_s29 = scalar_lea.hbm %s1902_s8, 128 }
  0x60   : > { %p1150_p4 = scmp.ne.s32.totalorder %s1902_s8, %s1149_s29  ;;  %p1156_p12 = scmp.lt.u32.totalorder %s1149_s29, %s1902_s8 }
  0x62   : > { %p1152_p3 = pnand %p1150_p4, %p1123_p1 }
  0x64   : > { %p1153_p8 = pneg %p1152_p3 }
  0x66   : > { %p1158_p5 = pnand %p1156_p12, %p1153_p8 }
  0x68   : > { %1161 = shalt.err (!%p1158_p5)
}
  0x69   : > { %s1162_s2 = scalar_lea.vmem %s1510_s23, 128  ;;  %p1170_p0 = scmp.lt.s32.totalorder %s1510_s23, %s1510_s23 }
  0x6a   : > { %p1163_p7 = scmp.ne.s32.totalorder %s1510_s23, %s1162_s2  ;;  %p1171_p2 = scmp.lt.s32.totalorder %s1162_s2, %s1162_s2 }
  0x6c   : > { %p1165_p9 = pnand %p1163_p7, %p1123_p1  ;;  %p1172_p4 = por %p1171_p2, %p1170_p0 }
  0x6e   : > { %p1166_p11 = pneg %p1165_p9 }
  0x70   : > { %p1173_p3 = pnand %p1172_p4, %p1166_p11 }
  0x72   : > { %1176 = shalt.err (!%p1173_p3)
}
  0x73   : > { %989 = dma.hbm_to_vmem [thread:$0]  (!%p1506_p13), %s1902_s8, 128, %s1510_s23, [#allocation14], %s1341_s22, %s1341_s22, %s1342_s24  }
  0x74   : > { %s58_s25 = sadd.s32 1, %s1329_s16  ;;  %s67_s26 = sadd.s32 1, %s1321_s14 }
  0x75   : > { %p60_p1 = scmp.ge.s32.totalorder %s58_s25, 2  ;;  %p74_p8 = scmp.ne.s32.totalorder %s1321_s14, %s1317_s13 }
  0x76   : > { %p75_p12 = scmp.eq.s32.totalorder %s1333_s3, 0  ;;  %p1003_p5 = scmp.lt.s32.totalorder %s1333_s3, 2 }
  0x77   : > { %s1940_s25 = smov (%p60_p1, %s58_s25), 0  ;;  %p1904_p9 = scmp.eq.s32.totalorder %s1476_s17, 1 }
  0x78   : > { %1903 = sst [smem:[#allocation24_spill]] %s1940_s25  ;;  %p76_p7 = por %p75_p12, %p74_p8 }
  0x79   : > { %p1574_p11 = por %p1904_p9, %p74_p8  ;;  %s62_s27 = ssub.s32 %s1329_s16, %s1940_s25 }
  0x7a   : > { %s326_s28 = sand.u32 1, %s1321_s14   ;;  %p65_p13 = scmp.eq.s32.totalorder %s62_s27, 0 }
  0x7b   : > { %s1905_s21 = scalar_select %p1574_p11, 1, 0 }
  0x7c   : > { %s1581_s23 = sshll.u32 %s326_s28, 4  ;;  %s1888_s22 = sshll.u32 %s1329_s16, 8 }
  0x7d   : > { %s1585_s24 = scalar_select %p65_p13, %s1321_s14, %s67_s26  }
  0x7e   : > { %s1907_s4 = sld [smem:[#allocation26_spill]]  ;;  %s330_s2 = scalar_lea.vmem [#allocation7], %s1581_s23 }
  0x7f   : > { %1906 = sst [smem:[#allocation25_spill]] %s1585_s24  ;;  %s339_s30 = sshll.u32 %s330_s2, 4  ;;  %s1601_s30 = int_to_ptr.vmem [resolvable:$true] %s339_s30 }
  0x80   : > { %p1597_p0 = pnand %p1003_p5, %p76_p7  ;;  %s1603_s26 = scalar_lea.sflag [#allocation8], %s326_s28 }
  0x82   : > { %p1179_p4 = pneg %p1597_p0 }
  0x84   : > { %s1592_s1 = scalar_lea.hbm %s1907_s4, %s1888_s22  ;;  %s1182_s2 = scalar_lea.hbm %s1907_s4, 512 }
  0x85   : > { %s1177_s27 = scalar_lea.hbm %s1592_s1, 256  ;;  %p1183_p8 = scmp.lt.u32.totalorder %s1592_s1, %s1907_s4 }
  0x86   : > { %p1178_p2 = scmp.ne.s32.totalorder %s1592_s1, %s1177_s27  ;;  %p1184_p12 = scmp.lt.u32.totalorder %s1182_s2, %s1177_s27 }
  0x87   : > { %p1186_p7 = scmp.lt.u32.totalorder %s1177_s27, %s1592_s1 }
  0x88   : > { %p1180_p3 = pnand %p1179_p4, %p1178_p2  ;;  %p1185_p5 = por %p1184_p12, %p1183_p8 }
  0x8a   : > { %p1181_p1 = pneg %p1180_p3  ;;  %p1187_p9 = por %p1186_p7, %p1185_p5 }
  0x8c   : > { %p1188_p13 = pnand %p1187_p9, %p1181_p1 }
  0x8e   : > { %1191 = shalt.err (!%p1188_p13)
}
  0x8f   : > { %s1192_s28 = scalar_lea.vmem %s1601_s30, 256  ;;  %s1343_s29 = smov [#allocation7]  }
  0x90   : > { %p1193_p2 = scmp.ne.s32.totalorder %s1601_s30, %s1192_s28  ;;  %s1197_s18 = sshll.u32 %s1343_s29, 4  ;;  %s1198_s18 = int_to_ptr.vmem [resolvable:$false] %s1197_s18 }
  0x91   : > { %s1199_s7 = scalar_lea.vmem %s1198_s18, 512  ;;  %p1200_p6 = scmp.lt.s32.totalorder %s1601_s30, %s1198_s18 }
  0x92   : > { %p1195_p3 = pnand %p1193_p2, %p1179_p4  ;;  %p1201_p8 = scmp.lt.s32.totalorder %s1199_s7, %s1192_s28 }
  0x94   : > { %p1196_p11 = pneg %p1195_p3  ;;  %p1202_p12 = por %p1201_p8, %p1200_p6 }
  0x96   : > { %p1203_p5 = pnand %p1202_p12, %p1196_p11 }
  0x98   : > { %1206 = shalt.err (!%p1203_p5)
}
  0x99   : > { %s1344_s22 = smov 128   ;;  %s1345_s27 = smov 8  }
  0x9a   : > { %993 = dma.hbm_to_vmem [thread:$0]  (!%p1597_p0), %s1592_s1, 256, %s1601_s30, %s1603_s26, %s1344_s22, %s1344_s22, %s1345_s27  }
  0x9b   : > { %s1909_s2 = sshll.u32 %s1329_s16, 8  ;;  %s353_s7 = scalar_lea.vmem [#allocation10], %s1581_s23 }
  0x9c   : > { %s1639_s18 = scalar_lea.hbm %s1874_s5, %s1909_s2  ;;  %s362_s4 = sshll.u32 %s353_s7, 4  ;;  %s1643_s4 = int_to_ptr.vmem [resolvable:$true] %s362_s4 }
  0x9d   : > { %s349_s8 = sand.u32 1, %s1333_s3   ;;  %s1207_s24 = scalar_lea.hbm %s1639_s18, 256 }
  0x9e   : > { %s1645_s25 = scalar_lea.sflag [#allocation11], %s349_s8  ;;  %p1208_p6 = scmp.ne.s32.totalorder %s1639_s18, %s1207_s24 }
  0x9f   : > { %s1212_s26 = scalar_lea.hbm %s1874_s5, 512  ;;  %p1213_p7 = scmp.lt.u32.totalorder %s1639_s18, %s1874_s5 }
  0xa0   : > { %p1210_p11 = pnand %p1208_p6, %p1179_p4  ;;  %p1214_p9 = scmp.lt.u32.totalorder %s1212_s26, %s1207_s24 }
  0xa1   : > { %p1216_p2 = scmp.lt.u32.totalorder %s1207_s24, %s1639_s18 }
  0xa2   : > { %p1211_p1 = pneg %p1210_p11  ;;  %p1215_p13 = por %p1214_p9, %p1213_p7 }
  0xa4   : > { %p1217_p3 = por %p1216_p2, %p1215_p13 }
  0xa6   : > { %p1218_p8 = pnand %p1217_p3, %p1211_p1 }
  0xa8   : > { %1221 = shalt.err (!%p1218_p8)
}
  0xa9   : > { %s1222_s8 = scalar_lea.vmem %s1643_s4, 256  ;;  %s1346_s23 = smov [#allocation10]  }
  0xaa   : > { %p1223_p12 = scmp.ne.s32.totalorder %s1643_s4, %s1222_s8  ;;  %s1227_s29 = sshll.u32 %s1346_s23, 4  ;;  %s1228_s29 = int_to_ptr.vmem [resolvable:$false] %s1227_s29 }
  0xab   : > { %s1229_s7 = scalar_lea.vmem %s1228_s29, 512  ;;  %p1230_p11 = scmp.lt.s32.totalorder %s1643_s4, %s1228_s29 }
  0xac   : > { %p1225_p5 = pnand %p1223_p12, %p1179_p4  ;;  %p1231_p7 = scmp.lt.s32.totalorder %s1229_s7, %s1222_s8 }
  0xae   : > { %p1226_p6 = pneg %p1225_p5  ;;  %p1232_p9 = por %p1231_p7, %p1230_p11 }
  0xb0   : > { %p1233_p13 = pnand %p1232_p9, %p1226_p6 }
  0xb2   : > { %1236 = shalt.err (!%p1233_p13)
}
  0xb3   : > { %996 = dma.hbm_to_vmem [thread:$0]  (!%p1597_p0), %s1639_s18, 256, %s1643_s4, %s1645_s25, %s1344_s22, %s1344_s22, %s1345_s27  }
  0xb4   : > { %387 = sbr.rel (%p1495_p10) target bundleno = 485 (0x1e5), region = 52  ;;  %s1677_s24 = sand.u32 (!%p1495_p10), 1, %s1317_s13  }
  0xb5   : > { %s913_s1 = sshll.u32 (!%p1495_p10), %s1677_s24, 4  ;;  %s390_s30 = scalar_lea.sflag (!%p1495_p10), [#allocation8], %s1677_s24 }
  0xb6   : > { %s1681_s26 = scalar_lea.vmem (!%p1495_p10), [#allocation7], %s913_s1  ;;  %p1910_p4 = scmp.ne.s32.totalorder (!%p1495_p10), %s1896_s19, 0 }
  0xbb   : > { %1292 = dma.done.wait (%p1910_p4), %s390_s30, 256  }
  0xbc   : > { %1294 = vsyncadd (%p1910_p4), %s390_s30, 4294967040  ;;  %s398_s4 = sand.u32 1, %s1476_s17   ;;  %s1688_s25 = scalar_lea.vmem [#allocation10], %s913_s1 }
  0xbd   : > { %s399_s0 = scalar_lea.sflag [#allocation11], %s398_s4 }
  0xbe   : > { %1296 = dma.done.wait (%p1910_p4), %s399_s0, 256  }
  0xbf   : > { %1298 = vsyncadd (%p1910_p4), %s399_s0, 4294967040  ;;  %p1911_p10 = scmp.eq.s32.totalorder %s1476_s17, 0 }
  0xc1   : > { %1300 = dma.done.wait (%p1911_p10), [#allocation11], 256   ;;  %p1912_p0 = pmov %p1911_p10 }
  0xc3   : > { %1302 = vsyncadd (%p1912_p0), [#allocation11], 4294967040  ;;  %p1913_p1 = pmov %p1912_p0 }
  0xc4   : > { %p1914_p2 = pmov %p1912_p0 }
  0xc5   : > { %1304 = dma.done.wait (%p1913_p1), [#allocation14], 128  }
  0xc6   : > { %1306 = vsyncadd (%p1914_p2), [#allocation14], 4294967168  ;;  %p459_p3 = scmp.lt.s32.totalorder %s1325_s15, 1  ;;  %v480_v0 = vlaneseq  ;;  %v1347_v1 = vmov 0.0   ;;  %s476_s19 = sld [smem:[#allocation4 + %s1325_s15]]  ;;  %vm1348_vm0 = vmmov 0  }
  0xc7   : > { %947 = vmatprep.subr.bf16.mxu0 %v1347_v1  ;;  %953 = vmatprep.subr.bf16.mxu1 %v1347_v1  ;;  %s477_s20 = sld [smem:[#allocation5 + %s1325_s15]]  ;;  %v1067_v4 = vld [vmem:[#allocation13] sm:$0xff]   ;;  %v1068_v6 = vld [vmem:[#allocation12] sm:$0xff]   ;;  %vm542_vm1 = vcmask 130048   ;;  %v1070_v10 = vld [vmem:[#allocation12 + $0x8] sm:$0xff]   ;;  %vm599_vm10 = vcmask 261120  }
  0xc8   : > { %949 = vmatprep.mubr.msk.bf16.mxu0 %vm1348_vm0, %v1347_v1  ;;  %s460_s17 = scalar_select %p459_p3, %s1325_s15, 1  ;;  %957 = vmatprep.mubr.msk.bf16.mxu1 %vm1348_vm0, %v1347_v1  ;;  %v1711_v2 = vshrl.u32 %v480_v0, 7  ;;  %v1071_v14 = vld [vmem:[%s1878_s9] sm:$0xff]   ;;  %v510_v18 = vld [vmem:[%s1681_s26 + $0x8] sm:$0xff]  ;;  %vm473_vm11 = vcmask 253952  }
  0xc9   : > { %s1715_s22 = sld [smem:[#allocation6 + %s1325_s15]]  ;;  %948 = vmatpush3.bf16.msra.mxu0 %v1067_v4  ;;  %954 = vmatpush3.bf16.msra.mxu1 %v1068_v6  ;;  %v509_v17 = vld [vmem:[%s1681_s26] sm:$0xff]  ;;  %v512_v21 = vld [vmem:[%s1688_s25 + $0x8] sm:$0xff]  ;;  %s1789_s30 = scalar_lea.vmem [#allocation15], %s1677_s24 }
  0xca   : > { %s938_s27 = sshll.u32 %s460_s17, 3  ;;  %s1718_s18 = sld [smem:[#allocation3 + %s1325_s15]]  ;;  %v482_v3 = vadd.s32 8, %v1711_v2  ;;  %961 = vmatprep.subr.bf16.mxu0 %v1347_v1  ;;  %955 = vmatprep.subr.bf16.mxu1 %v1347_v1  ;;  %v511_v20 = vld [vmem:[%s1688_s25] sm:$0xff]  ;;  %v514_v26 = vsub.f32 %v510_v18, %v512_v21  ;;  %v1072_v29 = vld [vmem:[%s1878_s9 + $0x8] sm:$0xff]   ;;  %v712_v44 = vsub.s32 0, %v1711_v2 }
  0xcb   : > { %s466_s8 = scalar_lea.vmem %s1875_s6, %s938_s27  ;;  %v513_v25 = vsub.f32 %v509_v17, %v511_v20  ;;  %474 = vst.msk [vmem:[%s1789_s30] sm:$0x1] %vm473_vm11, %v1347_v1  ;;  %v707_v42 = vld [vmem:[%s1879_s10] sm:$0x1]  ;;  %s760_s17 = sshll.u32 %s1789_s30, 4  ;;  %s1823_s17 = int_to_ptr.vmem [resolvable:$true] %s760_s17 }
  0xcc   : > { %v486_v5 = vstv %s476_s19  ;;  %v1069_v7 = vld [vmem:[%s466_s8] sm:$0xff]   ;;  %s933_s19 = sshll.u32 %s1325_s15, 4  ;;  %s1237_s2 = scalar_lea.vmem %s1823_s17, 16 }
  0xcd   : > { %vm1725_vm2 = vcmp.ge.s32.totalorder %v1711_v2, %v486_v5  ;;  %v489_v9 = vstv %s477_s20  ;;  %vm1730_vm3 = vcmp.ge.s32.totalorder %v482_v3, %v486_v5  ;;  %950 = vmatmul.mubr.msk.bf16.vlgmr.msra.gmra.mrb[0].mxu0 %vm542_vm1, %v1069_v7  ;;  %956 = vmatpush3.bf16.msra.mxu1 %v1070_v10  ;;  %v932_v57 = vld [vmem:[%s1880_s11] ss:$0 sm:$0xff]  ;;  %s1821_s27 = scalar_lea.hbm %s1881_s12, %s933_s19  ;;  %p1238_p8 = scmp.ne.s32.totalorder %s1823_s17, %s1237_s2 }
  0xce   : > { %vm1735_vm4 = vcmp.lt.s32.totalorder %v1711_v2, %v489_v9  ;;  %vm1739_vm5 = vcmp.lt.s32.totalorder %v482_v3, %v489_v9  ;;  %962 = vmatpush3.bf16.msra.mxu0 %v1071_v14  ;;  %965 = vmatprep.mubr.msk.bf16.mxu0 %vm1348_vm0, %v1347_v1  ;;  %p1927_p12 = scmp.ne.s32.totalorder %s1905_s21, 0  ;;  %s1349_s15 = smov [#allocation15]  }
  0xcf   : > { %v500_v15 = vstv %s1715_s22  ;;  %vm492_vm6 = vmand %vm1725_vm2, %vm1735_vm4  ;;  %963 = vmatprep.subr.bf16.mxu0 %v1347_v1  ;;  %s1241_s28 = sshll.u32 %s1349_s15, 4  ;;  %s1242_s28 = int_to_ptr.vmem [resolvable:$false] %s1241_s28 }
  0xd0   : > { %vm1754_vm7 = vcmp.lt.s32.totalorder %v482_v3, %v500_v15  ;;  %vm493_vm8 = vmand %vm1730_vm3, %vm1739_vm5  ;;  %v919_v19 = vsel %vm492_vm6, 1.0, %v1347_v1  ;;  %v515_v22 = vstv %s1718_s18  ;;  %vm501_vm12 = vcmp.lt.s32.totalorder %v1711_v2, %v500_v15  ;;  %s748_s18 = scalar_lea.sflag [#allocation9], %s1677_s24  ;;  %p1239_p5 = pnand %p1238_p8, %p1927_p12 }
  0xd1   : > { %v920_v23 = vsel %vm493_vm8, 1.0, %v1347_v1  ;;  %v498_v24 = vsub.f32 1.0, %v919_v19  ;;  %vm1779_vm9 = vmand %vm493_vm8, %vm1754_vm7  ;;  %v516_v30 = vmul.f32 %v515_v22, %v513_v25  ;;  %v517_v31 = vmul.f32 %v515_v22, %v514_v26  ;;  %s1243_s8 = scalar_lea.vmem %s1242_s28, 32  ;;  %p1244_p11 = scmp.lt.s32.totalorder %s1823_s17, %s1242_s28 }
  0xd2   : > { %v499_v27 = vsub.f32 1.0, %v920_v23  ;;  %964 = vmatpush3.bf16.msra.mxu0 %v1072_v29  ;;  %v708_v43 = vmul.f32 %v707_v42, %v515_v22  ;;  %vm503_vm13 = vmand %vm492_vm6, %vm501_vm12  ;;  %v922_v2 = vsel %vm1779_vm9, 1.0, %v1347_v1  ;;  %p1240_p6 = pneg %p1239_p5  ;;  %p1245_p7 = scmp.lt.s32.totalorder %s1243_s8, %s1237_s2 }
  0xd3   : > { %v520_v32 = vmul.f32 %v509_v17, %v498_v24  ;;  %v518_v34 = vadd.f32 %v516_v30, %v511_v20  ;;  %v519_v35 = vadd.f32 %v517_v31, %v512_v21  ;;  %v921_v4 = vsel %vm503_vm13, 1.0, %v1347_v1 }
  0xd4   : > { %v521_v33 = vmul.f32 %v510_v18, %v499_v27  ;;  %v713_v50 = vrot.slane %v708_v43, %v712_v44  ;;  %v734_v18 = vld [vmem:[%s1789_s30] sm:$0x1]  ;;  %p1246_p9 = por %p1245_p7, %p1244_p11 }
  0xd5   : > { %v522_v37 = vpack.c.bf16 %v519_v35, %v518_v34 }
  0xd6   : > { %v644_v36 = vpack.c.bf16 %v521_v33, %v520_v32  ;;  %p1247_p13 = pnand %p1246_p9, %p1240_p6 }
  0xd7   : > { %958 = vmatmul.mubr.msk.bf16.vlgmr.msra.gmra.mrb[0].mxu1 %vm599_vm10, %v522_v37 }
  0xd8   : > { %966 = vmatmul.mubr.msk.bf16.vlgmr.msra.gmra.mrb[4].mxu0 %vm599_vm10, %v644_v36 }
 0x1a0   : > { %v580_v38 = vpop.f32.mrb[0].mxu0 }
 0x1a1   : > { %v951_v39 = vpop.f32.mrb[1].mxu0 }
 0x1a2   : > { %v583_v40 = vpop.f32.mrb[2].mxu0 }
 0x1a3   : > { %v952_v41 = vpop.f32.mrb[3].mxu0 }
 0x1aa   : > { %v637_v46 = vpop.f32.mrb[0].mxu1 }
 0x1ab   : > { %v698_v45 = vpop.f32.mrb[4].mxu0  ;;  %v638_v48 = vadd.f32 %v637_v46, %v580_v38  ;;  %v959_v49 = vpop.f32.mrb[1].mxu1 }
 0x1ac   : > { %v967_v47 = vpop.f32.mrb[5].mxu0  ;;  %v640_v52 = vpop.f32.mrb[2].mxu1 }
 0x1ad   : > { %v701_v51 = vpop.f32.mrb[6].mxu0  ;;  %v641_v54 = vadd.f32 %v640_v52, %v583_v40  ;;  %v960_v55 = vpop.f32.mrb[3].mxu1  ;;  %v705_v56 = vadd.f32 %v698_v45, %v638_v48 }
 0x1ae   : > { %v968_v53 = vpop.f32.mrb[7].mxu0 }
 0x1af   : > { %v715_v58 = vadd.f32 %v713_v50, %v705_v56  ;;  %v706_v59 = vadd.f32 %v701_v51, %v641_v54 }
 0x1b1   : > { %v724_v60 = vadd.f32 %v932_v57, %v715_v58  ;;  %v716_v61 = vadd.f32 %v713_v50, %v706_v59 }
 0x1b3   : > { %1073 = vtanh.f32 %v724_v60  ;;  %v725_v62 = vadd.f32 %v932_v57, %v716_v61 }
 0x1b5   : > { %1075 = vtanh.f32 %v725_v62 }
 0x1bd   : > { %v1074_v63 = vpop.eup %1073 }
 0x1be   : > { %v728_v0 = vsub.f32 %v1074_v63, %v513_v25 }
 0x1bf   : > { %v1076_v3 = vpop.eup %1075 }
 0x1c0   : > { %v730_v5 = vmul.f32 %v728_v0, %v728_v0  ;;  %v729_v6 = vsub.f32 %v1076_v3, %v514_v26 }
 0x1c2   : > { %v732_v7 = vmul.f32 %v921_v4, %v730_v5  ;;  %v731_v8 = vmul.f32 %v729_v6, %v729_v6 }
 0x1c4   : > { %v733_v9 = vmul.f32 %v922_v2, %v731_v8  ;;  %v735_v10 = vsel %vm599_vm10, %v732_v7, 0.0 }
 0x1c6   : > { %v736_v11 = vsel %vm599_vm10, %v733_v9, 0.0 }
 0x1c7   : > { %v737_v12 = vadd.f32 %v736_v11, %v735_v10 }
 0x1c9   : > { %v738_v13 = vrot.slane %v737_v12, 4 }
 0x1cb   : > { %v739_v14 = vadd.f32 %v738_v13, %v737_v12 }
 0x1cd   : > { %v740_v15 = vrot.slane %v739_v14, 2 }
 0x1cf   : > { %v741_v16 = vadd.f32 %v740_v15, %v739_v14 }
 0x1d1   : > { %v742_v17 = vrot.slane %v741_v16, 1 }
 0x1d3   : > { %v743_v1 = vadd.f32 %v742_v17, %v741_v16 }
 0x1d5   : > { %v744_v19 = vadd.f32 %v743_v1, %v734_v18 }
 0x1d7   : > { %746 = vst.msk [vmem:[%s1789_s30] sm:$0x1] %vm473_vm11, %v744_v19 }
 0x1d8   : > { %1250 = shalt.err (!%p1247_p13)
}
 0x1d9   : > { %s1251_s24 = scalar_lea.hbm %s1821_s27, 16  ;;  %s1255_s7 = scalar_lea.hbm %s1881_s12, 32 }
 0x1da   : > { %p1252_p4 = scmp.ne.s32.totalorder %s1821_s27, %s1251_s24  ;;  %p1256_p1 = scmp.lt.u32.totalorder %s1821_s27, %s1881_s12 }
 0x1db   : > { %p1257_p2 = scmp.lt.u32.totalorder %s1255_s7, %s1251_s24  ;;  %p1259_p8 = scmp.lt.u32.totalorder %s1251_s24, %s1821_s27 }
 0x1dc   : > { %p1253_p10 = pnand %p1252_p4, %p1927_p12 }
 0x1dd   : > { %p1258_p3 = por %p1257_p2, %p1256_p1 }
 0x1de   : > { %p1254_p0 = pneg %p1253_p10 }
 0x1df   : > { %p1260_p5 = por %p1259_p8, %p1258_p3 }
 0x1e1   : > { %p1261_p6 = pnand %p1260_p5, %p1254_p0 }
 0x1e3   : > { %1264 = shalt.err (!%p1261_p6)
}
 0x1e4   : > { %981 = dma.vmem_to_hbm [thread:$0]  (%p1927_p12), %s1823_s17, 16, %s1821_s27, %s748_s18  }
 0x1e5 PF: > { %s1928_s26 = sld [smem:[#allocation22_spill]]  ;;  %s1929_s4 = sld [smem:[#allocation23_spill]] }
 0x1e6   : > { %p1931_p7 = scmp.ge.s32.totalorder %s1333_s3, 2 }
 0x1eb   : > { %s772_s0 = sand.u32 1, %s1928_s26   ;;  %p1930_p11 = scmp.ne.s32.totalorder %s1929_s4, 0 }
 0x1ec   : > { %s773_s25 = scalar_lea.sflag [#allocation9], %s772_s0 }
 0x1ed   : > { %p998_p9 = pnand %p1931_p7, %p1930_p11 }
 0x1ef   : > { %1308 = dma.done.wait (!%p998_p9), %s773_s25, 16  }
 0x1f0   : > { %1310 = vsyncadd (!%p998_p9), %s773_s25, 4294967280  ;;  %s46_s3 = sadd.s32 1, %s1333_s3   ;;  %s1932_s21 = sld [smem:[#allocation25_spill]] }
 0x1f1   : > { %p43_p13 = scmp.ge.s32.totalorder %s46_s3, 4   ;;  %s1933_s19 = sld [smem:[#allocation24_spill]] }
 0x1f2   : > { %s1934_s30 = smov %s1317_s13  ;;  %s1935_s13 = smov %s1321_s14 }
 0x1f3   : > { %s1937_s15 = smov %s1329_s16  ;;  %45 = sbr.rel (!%p43_p13) target bundleno = 50 (0x32), region = 125 }
 0x1f6   : > { %s1936_s14 = smov %s1932_s21 }
 0x1f7   : > { %s1938_s16 = smov %s1933_s19 }
 0x1fa   :  { %777 = vsyncpa [#allocation8], 1 }
 0x1fb   :  { %779 = vsyncpa [#allocation8 + $0x1], 1 }
 0x1fc   :  { %780 = vsyncpa [#allocation11], 1 }
 0x1fd   :  { %782 = vsyncpa [#allocation11 + $0x1], 1 }
 0x1fe   :  { %783 = vsyncpa [#allocation14], 1 }
 0x1ff   :  { %784 = vsyncpa [#allocation9], 1 }
 0x200   :  { %786 = vsyncpa [#allocation9 + $0x1], 1 }

</bundles_post_ra>
